<compile_context>
chip_gen: v7x
topology: tpu7x:2x2x1
jax: 0.10.0
libtpu: 0.0.40
codegen_flags: <defaults>
</compile_context>

<pallas_src>
import functools

import jax
import jax.numpy as jnp
from jax.experimental import pallas as pl
from jax.experimental.pallas import tpu as pltpu

_SUBLANE = 8
_LANE = 128
_MXU_N = 256  # MXU width on v6e / v7x


def _cdiv(a, b):
    return (a + b - 1) // b


def _round_up(x, m):
    return ((x + m - 1) // m) * m


def _vmem_capacity_bytes():
    try:
        return int(pltpu.get_tpu_info().vmem_capacity_bytes)
    except Exception:
        return 64 * 1024 * 1024  # conservative fallback (v7x per-TensorCore VMEM)


# ----------------------------------------------------------------------------
# Kernels
# ----------------------------------------------------------------------------
def _probe_kernel_direct(x_ref, w_ref, o_ref, *, compute_dtype):
    # x_ref: (tb, D)   activations  [M, K]
    # w_ref: (D, tf)   weight, MXU-native [K, N] layout (pre-transposed)
    # o_ref: (tb, tf)
    x = x_ref[...]
    w = w_ref[...]
    if compute_dtype is not None:
        x = x.astype(compute_dtype)
        w = w.astype(compute_dtype)
    o_ref[...] = jnp.dot(x, w, preferred_element_type=jnp.float32).astype(o_ref.dtype)


def _probe_kernel_acc(x_ref, w_ref, o_ref, acc_ref, *, compute_dtype):
    # K-tiled variant: innermost 'arbitrary' grid axis accumulates into f32 scratch.
    @pl.when(pl.program_id(2) == 0)
    def _():
        acc_ref[...] = jnp.zeros_like(acc_ref)

    x = x_ref[...]
    w = w_ref[...]
    if compute_dtype is not None:
        x = x.astype(compute_dtype)
        w = w.astype(compute_dtype)
    acc_ref[...] += jnp.dot(x, w, preferred_element_type=jnp.float32)

    @pl.when(pl.program_id(2) == pl.num_programs(2) - 1)
    def _():
        o_ref[...] = acc_ref[...].astype(o_ref.dtype)


# ----------------------------------------------------------------------------
# Tile selection
# ----------------------------------------------------------------------------
def _fit_axis(size, target, gran):
    """Split `size` into near-equal tiles, each a multiple of `gran` and <= target.

    Returns (tile, padded_size, num_tiles). Padding waste is < num_tiles * gran,
    instead of rounding the whole axis up to a full `target`-wide tile.
    """
    padded_min = _round_up(size, gran)
    target = max(gran, _round_up(target, gran))
    n = max(1, _cdiv(padded_min, target))
    tile = _round_up(_cdiv(padded_min, n), gran)
    return tile, tile * n, n


def _choose_tiles(B, D, F, x_item, w_item, o_item, budget):
    B8 = _round_up(B, _SUBLANE)
    F_lane = _round_up(F, _LANE)
    # MXU-friendly feature granularity (256-wide array on v6e/v7x); 128 for tiny F.
    f_gran = _MXU_N if F_lane >= _MXU_N else _LANE

    # Targets: large tf (divides the x HBM re-read), moderate tb, full-D K tile.
    tf_t = min(2048, _round_up(F_lane, f_gran))
    tb_t = min(512, B8)
    tk_t = D  # no K-tiling unless the budget forces it

    def usage(tb_, tf_, tk_):
        return (2 * tb_ * tk_ * x_item          # x tile, double buffered
                + 2 * tk_ * tf_ * w_item        # weight tile, double buffered
                + 2 * tb_ * tf_ * o_item        # output tile, double buffered
                + (tb_ * tf_ * 4 if tk_ < D else 0))  # f32 accumulator scratch

    # 1) shrink tb first (cheapest to give up) ...
    while usage(tb_t, tf_t, tk_t) > budget and tb_t > 128:
        tb_t = max(128, _round_up(tb_t // 2, _SUBLANE))
    # 2) ... then K-tile D (multiples of 256; keeps tf MXU-friendly on v7x) ...
    while usage(tb_t, tf_t, tk_t) > budget and tk_t > 512:
        tk_t = max(512, _round_up(tk_t // 2, _MXU_N))
    # 3) ... shrink tf last (it is the re-read / MXU-N-fill knob) ...
    while usage(tb_t, tf_t, tk_t) > budget and tf_t > f_gran:
        tf_t = max(f_gran, _round_up(tf_t // 2, f_gran))
    # 4) last resort for extreme shapes.
    while usage(tb_t, tf_t, tk_t) > budget and tb_t > _SUBLANE:
        tb_t = max(_SUBLANE, _round_up(tb_t // 2, _SUBLANE))
    while usage(tb_t, tf_t, tk_t) > budget and tk_t > _MXU_N:
        tk_t = max(_MXU_N, _round_up(tk_t // 2, _MXU_N))

    tb, B_pad, nb = _fit_axis(B, tb_t, _SUBLANE)
    tf, F_pad, nf = _fit_axis(F, tf_t, f_gran)
    if tk_t >= D:
        tk, D_pad, nk = D, D, 1              # full-K block: no (8,128) constraint
    else:
        tk, D_pad, nk = _fit_axis(D, tk_t, _MXU_N)
    return (tb, B_pad, nb), (tf, F_pad, nf), (tk, D_pad, nk)


# ----------------------------------------------------------------------------
# Public API
# ----------------------------------------------------------------------------
def prepare_probe_weight(weight):
    """One-time (parameter-load-time) prep: transpose the PyTorch
    (n_features, d_activation) Linear weight to the MXU-native
    (d_activation, n_features) layout. Do NOT call per forward pass."""
    return jnp.asarray(weight).T


def multi_probe_forward(x, weight_t, *, compute_dtype=None):
    """y = x @ W.T, matching nn.Linear(d_activation, n_features, bias=False).

    x:        (B, d_activation)
    weight_t: (d_activation, n_features) -- pre-transposed via prepare_probe_weight.
    compute_dtype: optionally cast the matmul operands inside the kernel
              (e.g. jnp.bfloat16); accumulation stays f32.
    returns:  (B, n_features) in x.dtype.
    """
    B, D = x.shape
    D_w, F = weight_t.shape
    assert D == D_w, f"d_activation mismatch: {D} vs {D_w}"

    x_item = jnp.dtype(x.dtype).itemsize
    w_item = jnp.dtype(weight_t.dtype).itemsize
    o_item = x_item

    capacity = _vmem_capacity_bytes()
    budget = int(capacity * 0.75)  # ~96 MiB on v5e/v6e (128 MiB), ~48 MiB on v7x (64 MiB)

    (tb, B_pad, nb), (tf, F_pad, nf), (tk, D_pad, nk) = _choose_tiles(
        B, D, F, x_item, w_item, o_item, budget)

    # Zero-padding is exact for the contraction and sliced away below; aligned
    # shapes skip the pad (no extra HBM copy).
    x_p = x
    if (B_pad, D_pad) != (B, D):
        x_p = jnp.pad(x, ((0, B_pad - B), (0, D_pad - D)))
    w_p = weight_t
    if (D_pad, F_pad) != (D, F):
        w_p = jnp.pad(weight_t, ((0, D_pad - D), (0, F_pad - F)))

    # Grid order: the inner-varying operand is the one that gets re-fetched.
    #   batch-outer HBM cost ~ X + nb*W ; feature-outer ~ nf*X + W.
    x_bytes = B_pad * D_pad * x_item
    w_bytes = D_pad * F_pad * w_item
    batch_outer = (nb - 1) * w_bytes <= (nf - 1) * x_bytes
    # v7x megacore: ensure the outer parallel axis has >1 step when possible.
    # (Traffic-free: if the preferred outer axis has a single step, both orders
    # have identical HBM traffic.)
    if batch_outer and nb == 1 and nf > 1:
        batch_outer = False
    elif (not batch_outer) and nf == 1 and nb > 1:
        batch_outer = True

    # Accurate HBM traffic (with re-read factors) for the scheduler hint.
    if nk == 1:
        x_reads = 1 if batch_outer else (1 if nb == 1 else nf)
        w_reads = (1 if nf == 1 else nb) if batch_outer else 1
    else:
        x_reads = 1 if nf == 1 else nf
        w_reads = 1 if nb == 1 else nb
    cost = pl.CostEstimate(
        flops=2 * B_pad * D_pad * F_pad,
        transcendentals=0,
        bytes_accessed=(x_reads * x_bytes + w_reads * w_bytes
                        + B_pad * F_pad * o_item),
    )

    vmem_usage = (2 * tb * tk * x_item + 2 * tk * tf * w_item
                  + 2 * tb * tf * o_item + (tb * tf * 4 if nk > 1 else 0))
    vmem_limit = max(vmem_usage + (8 << 20), 32 << 20)
    vmem_limit = int(min(vmem_limit, capacity - (2 << 20)))

    if nk == 1:
        grid = (nb, nf) if batch_outer else (nf, nb)
        if batch_outer:
            x_map = lambda b, f: (b, 0)
            w_map = lambda b, f: (0, f)
            o_map = lambda b, f: (b, f)
        else:
            x_map = lambda f, b: (b, 0)
            w_map = lambda f, b: (0, f)
            o_map = lambda f, b: (b, f)
        kernel = functools.partial(_probe_kernel_direct, compute_dtype=compute_dtype)
        scratch = ()
        dims = ("parallel", "parallel")
    else:
        grid = (nb, nf, nk) if batch_outer else (nf, nb, nk)
        if batch_outer:
            x_map = lambda b, f, k: (b, k)
            w_map = lambda b, f, k: (k, f)
            o_map = lambda b, f, k: (b, f)
        else:
            x_map = lambda f, b, k: (b, k)
            w_map = lambda f, b, k: (k, f)
            o_map = lambda f, b, k: (b, f)
        kernel = functools.partial(_probe_kernel_acc, compute_dtype=compute_dtype)
        scratch = (pltpu.VMEM((tb, tf), jnp.float32),)
        dims = ("parallel", "parallel", "arbitrary")

    out = pl.pallas_call(
        kernel,
        out_shape=jax.ShapeDtypeStruct((B_pad, F_pad), x.dtype),
        grid_spec=pltpu.PrefetchScalarGridSpec(
            num_scalar_prefetch=0,
            grid=grid,
            in_specs=[
                pl.BlockSpec((tb, tk), x_map),   # activations [M, K]
                pl.BlockSpec((tk, tf), w_map),   # weight, MXU-native [K, N]
            ],
            out_specs=pl.BlockSpec((tb, tf), o_map),
            scratch_shapes=scratch,
        ),
        compiler_params=pltpu.CompilerParams(
            dimension_semantics=dims,
            vmem_limit_bytes=vmem_limit,
        ),
        cost_estimate=cost,
    )(x_p, w_p)

    if (B_pad, F_pad) != (B, F):
        out = out[:B, :F]
    return out


if __name__ == "__main__":
    # Small shapes consistent with the module: batch=8, d_activation=32, n_features=16
    batch = 8
    d_activation = 32
    n_features = 16

    key = jax.random.PRNGKey(0)
    kx, kw = jax.random.split(key)

    x = jax.random.normal(kx, (batch, d_activation), dtype=jnp.float32)
    # Deterministic synthetic init in the PyTorch Linear layout: (n_features, d_activation)
    bound = 1.0 / (d_activation ** 0.5)
    weight = jax.random.uniform(
        kw, (n_features, d_activation), dtype=jnp.float32, minval=-bound, maxval=bound
    )

    # One-time, load-time weight prep (MXU-native (D, F) layout); NOT per call.
    weight_t = prepare_probe_weight(weight)

    y = multi_probe_forward(x, weight_t)
    y = jax.block_until_ready(y)

    # Reference check against plain JAX (x @ W.T)
    y_ref = x @ weight.T
    assert y.shape == (batch, n_features)
    assert jnp.allclose(y, y_ref, atol=1e-5, rtol=1e-5), "mismatch vs reference"

    print("KERNEL_OK")
</pallas_src>

<mosaic_0001>
module attributes {stable_mosaic.version = 11 : i64} {
  func.func @_probe_kernel_direct(%arg0: i32, %arg1: i32, %arg2: memref<8x32xf32, #tpu.memory_space<vmem>>, %arg3: memref<32x128xf32, #tpu.memory_space<vmem>>, %arg4: memref<8x128xf32, #tpu.memory_space<vmem>>) attributes {dimension_semantics = [#tpu.dimension_semantics<parallel>, #tpu.dimension_semantics<parallel>], iteration_bounds = array<i64: 1, 1>, scalar_prefetch = 0 : i64, scratch_operands = 0 : i64, tpu.core_type = #tpu.core_type<tc>, window_params = [{transform_indices = @transform_0, window_bounds = array<i64: 8, 32>}, {transform_indices = @transform_1, window_bounds = array<i64: 32, 128>}, {transform_indices = @transform_2, window_bounds = array<i64: 8, 128>}]} {
    %c0 = arith.constant 0 : index
    %c0_0 = arith.constant 0 : index
    %0 = vector.load %arg2[%c0, %c0_0] : memref<8x32xf32, #tpu.memory_space<vmem>>, vector<8x32xf32>
    %c0_1 = arith.constant 0 : index
    %c0_2 = arith.constant 0 : index
    %1 = vector.load %arg3[%c0_1, %c0_2] : memref<32x128xf32, #tpu.memory_space<vmem>>, vector<32x128xf32>
    %cst = arith.constant dense<0.000000e+00> : vector<8x128xf32>
    %2 = tpu.matmul %0, %1, %cst {dimension_numbers = #tpu.dot_dimension_numbers<[1], [0], [0], [1], [0, 0, 1, 1], [], []>} : vector<8x32xf32>, vector<32x128xf32>, vector<8x128xf32> -> vector<8x128xf32>
    %c0_3 = arith.constant 0 : index
    %c0_4 = arith.constant 0 : index
    %3 = vector.load %arg4[%c0_3, %c0_4] : memref<8x128xf32, #tpu.memory_space<vmem>>, vector<8x128xf32>
    tpu.vector_store %arg4[%c0_3, %c0_4], %2 {strides = array<i32>} : memref<8x128xf32, #tpu.memory_space<vmem>>, vector<8x128xf32>,
    return
  }
  func.func @transform_0(%arg0: i32, %arg1: i32) -> (i32, i32) {
    %c0_i32 = arith.constant 0 : i32
    %c0_i32_0 = arith.constant 0 : i32
    return %arg0, %c0_i32 : i32, i32
  }
  func.func @transform_1(%arg0: i32, %arg1: i32) -> (i32, i32) {
    %c0_i32 = arith.constant 0 : i32
    %c0_i32_0 = arith.constant 0 : i32
    return %c0_i32, %arg1 : i32, i32
  }
  func.func @transform_2(%arg0: i32, %arg1: i32) -> (i32, i32) {
    %c0_i32 = arith.constant 0 : i32
    return %arg0, %arg1 : i32, i32
  }
}

</mosaic_0001>

<bundles_post_ra>
// kernel: tpu_custom_call.1
= control target key start
LH: loop header
LB: loop body
LE: loop exit
PB: predicated region body
PF: predicated region fallthrough
CT: control target
= control target key end

     0   :  { %7 = vsyncpa [#allocation3], 0  ;;  %s303_s0 = inlined_call_operand.hbm [shape: f32[8,32], index: 0, kind: input, shape index: {}]   ;;  %s304_s1 = inlined_call_operand.hbm [shape: f32[32,128], index: 1, kind: input, shape index: {}]   ;;  %s305_s2 = inlined_call_operand.hbm [shape: f32[8,128], index: 2, kind: output, shape index: {}]  }
   0x1   :  { %8 = vsyncpa [#allocation6], 0 }
   0x2   :  { %9 = vsyncpa [#allocation4], 0  ;;  %s237_s9 = smov [#allocation2]   ;;  %s238_s11 = smov [#allocation5]  }
   0x3   :  { %s16_s10 = sshll.u32 %s237_s9, 4  ;;  %s25_s12 = sshll.u32 %s238_s11, 4  ;;  %s17_s10 = int_to_ptr.vmem [resolvable:$true] %s16_s10  ;;  %s260_s12 = int_to_ptr.vmem [resolvable:$true] %s25_s12 }
   0x4   :  { %s165_s15 = scalar_lea.hbm %s303_s0, 128 }
   0x5   :  { %p166_p0 = scmp.ne.s32.totalorder %s303_s0, %s165_s15  ;;  %p169_p1 = scmp.lt.u32.totalorder %s165_s15, %s303_s0 }
   0x7   :  { %p171_p2 = pnand %p169_p1, %p166_p0 }
   0x9   :  { %174 = shalt.err (!%p171_p2)
}
   0xa   :  { %s175_s20 = scalar_lea.vmem %s17_s10, 128  ;;  %p180_p4 = scmp.lt.s32.totalorder %s17_s10, %s17_s10 }
   0xb   :  { %p176_p3 = scmp.ne.s32.totalorder %s17_s10, %s175_s20  ;;  %p181_p5 = scmp.lt.s32.totalorder %s175_s20, %s175_s20 }
   0xd   :  { %p182_p6 = por %p181_p5, %p180_p4 }
   0xf   :  { %p183_p7 = pnand %p182_p6, %p176_p3 }
  0x11   :  { %186 = shalt.err (!%p183_p7)
}
  0x12   :  { %19 = dma.hbm_to_vmem [thread:$0]  %s303_s0, 128, %s17_s10, [#allocation3]  }
  0x13   :  { %s187_s25 = scalar_lea.hbm %s304_s1, 512 }
  0x14   :  { %p188_p8 = scmp.ne.s32.totalorder %s304_s1, %s187_s25  ;;  %p191_p9 = scmp.lt.u32.totalorder %s187_s25, %s304_s1 }
  0x16   :  { %p193_p10 = pnand %p191_p9, %p188_p8 }
  0x18   :  { %196 = shalt.err (!%p193_p10)
}
  0x19   :  { %s197_s30 = scalar_lea.vmem %s260_s12, 512  ;;  %p202_p12 = scmp.lt.s32.totalorder %s260_s12, %s260_s12 }
  0x1a   :  { %p198_p11 = scmp.ne.s32.totalorder %s260_s12, %s197_s30  ;;  %p203_p13 = scmp.lt.s32.totalorder %s197_s30, %s197_s30 }
  0x1c   :  { %p204_p0 = por %p203_p13, %p202_p12 }
  0x1e   :  { %p205_p1 = pnand %p204_p0, %p198_p11 }
  0x20   :  { %208 = shalt.err (!%p205_p1)
}
  0x21   :  { %s239_s0 = smov 128   ;;  %s240_s3 = smov 8  }
  0x22   :  { %31 = dma.hbm_to_vmem [thread:$0]  %s304_s1, 512, %s260_s12, [#allocation6], %s239_s0, %s239_s0, %s240_s3  }
  0x23   :  { %231 = dma.done.wait [#allocation3], 128  }
  0x24   :  { %232 = vsyncadd [#allocation3], 4294967168 }
  0x25   :  { %233 = dma.done.wait [#allocation6], 512  }
  0x26   :  { %234 = vsyncadd [#allocation6], 4294966784  ;;  %v241_v0 = vmov 0.0|0.0   ;;  %vm242_vm0 = vmmov 0   ;;  %v243_v1 = vmov 0.0   ;;  %v39_v2 = vld [vmem:[#allocation5] sm:$0xff] }
  0x27   :  { %151 = vmatprep.subr.bf16.mxu0 %v241_v0  ;;  %148 = vmatprep.mubr.msk.f32.mxu0 %vm242_vm0, %v243_v1  ;;  %v40_v3 = vld [vmem:[#allocation5 + $0x8] sm:$0xff]  ;;  %v41_v4 = vld [vmem:[#allocation5 + $0x10] sm:$0xff]  ;;  %v42_v6 = vld [vmem:[#allocation5 + $0x18] sm:$0xff]  ;;  %vm43_vm1 = vcmask 261120   ;;  %s244_s1 = smov [#allocation7]  }
  0x28   :  { %v152_v5 = vpack.c.bf16 %v40_v3, %v39_v2  ;;  %v155_v7 = vpack.c.bf16 %v42_v6, %v41_v4  ;;  %v38_v8 = vld [vmem:[#allocation2] sm:$0xff]  ;;  %s124_s6 = sshll.u32 %s244_s1, 4  ;;  %s125_s6 = int_to_ptr.vmem [resolvable:$true] %s124_s6 }
  0x29   :  { %s209_s7 = scalar_lea.vmem %s125_s6, 128  ;;  %p214_p3 = scmp.lt.s32.totalorder %s125_s6, %s125_s6 }
  0x2a   :  { %153 = vmatpush3.bf16.msra.mxu0 %v152_v5  ;;  %p210_p2 = scmp.ne.s32.totalorder %s125_s6, %s209_s7  ;;  %p215_p4 = scmp.lt.s32.totalorder %s209_s7, %s209_s7 }
  0x2b   :  { %154 = vmatprep.subr.bf16.mxu0 %v241_v0 }
  0x2c   :  { %p216_p5 = por %p215_p4, %p214_p3 }
  0x2e   :  { %156 = vmatpush3.bf16.msra.mxu0 %v155_v7  ;;  %p217_p6 = pnand %p216_p5, %p210_p2 }
  0x31   :  { %149 = vmatmul.mubr.msk.f32.vlgmr.msra.gmra.mrb[0].mxu0 %vm43_vm1, %v38_v8 }
 0x104   :  { %v113_v9 = vpop.f32.mrb[0].mxu0 }
 0x105   :  { %117 = vst [vmem:[#allocation7] sm:$0xff] %v113_v9  ;;  %v150_v10 = vpop.f32.mrb[1].mxu0 }
 0x106   :  { %220 = shalt.err (!%p217_p6)
}
 0x107   :  { %s221_s10 = scalar_lea.hbm %s305_s2, 128 }
 0x108   :  { %p222_p7 = scmp.ne.s32.totalorder %s305_s2, %s221_s10  ;;  %p225_p8 = scmp.lt.u32.totalorder %s221_s10, %s305_s2 }
 0x10a   :  { %p227_p9 = pnand %p225_p8, %p222_p7 }
 0x10c   :  { %230 = shalt.err (!%p227_p9)
}
 0x10d   :  { %127 = dma.vmem_to_hbm [thread:$0]  %s125_s6, 128, %s305_s2, [#allocation4]  }
 0x10e   :  { %235 = dma.done.wait [#allocation4], 128  }
 0x10f   :  { %236 = vsyncadd [#allocation4], 4294967168 }
 0x110   :  { %131 = vsyncpa [#allocation3], 1 }
 0x111   :  { %132 = vsyncpa [#allocation6], 1 }
 0x112   :  { %133 = vsyncpa [#allocation4], 1 }

</bundles_post_ra>
